<compile_context>
chip_gen: v7x
topology: tpu7x:2x2x1
jax: 0.10.0
libtpu: 0.0.40
codegen_flags: <defaults>
</compile_context>

<pallas_src>
import functools
import inspect

import jax
import jax.numpy as jnp
from jax import lax
from jax.experimental import pallas as pl
from jax.experimental.pallas import tpu as pltpu

EPS = 1e-6           # ieps_ln_default
_MIN_TILE_N = 256    # MXU-friendly row-tile floor (256x256 MXU on v6e/v7x)
_MAX_TILE_N = 1024


def _round_up(a, b):
    return -(-a // b) * b


def _cdiv(a, b):
    return -(-a // b)


def _single_buffer_kwargs():
    """pipeline_mode=Buffered(1) for constant-index (pinned) blocks, if supported."""
    try:
        if hasattr(pl, "Buffered") and \
                "pipeline_mode" in inspect.signature(pl.BlockSpec).parameters:
            return {"pipeline_mode": pl.Buffered(1)}
    except (TypeError, ValueError):
        pass
    return {}


def _vmem_budget_bytes():
    """Generation-aware VMEM budget: 75% of physical (≈48 MiB v7x, ≈96 MiB v5e/v6e)."""
    try:
        cap = pltpu.get_tpu_info().vmem_capacity_bytes
    except Exception:
        cap = 64 << 20          # conservative fallback = v7x per-core VMEM
    return max(32 << 20, int(cap) * 3 // 4)


def _layernorm(x, gamma, beta):
    # Two-pass (x-mu)^2 variance: matches nn.LayerNorm (biased var) without the
    # E[x^2]-mu^2 cancellation risk on large-mean post-GEMM activations.
    mu = jnp.mean(x, axis=-1, keepdims=True)
    d = x - mu
    var = jnp.mean(d * d, axis=-1, keepdims=True)
    return d * lax.rsqrt(var + EPS) * gamma + beta


def _lstm_ffn_kernel(x_ref, o_ref, c_ref,
                     w_ref, b_ref,
                     g1_ref, b1_ref, g2_ref, b2_ref,
                     w2_ref, bo_ref,
                     out_ref, cell_ref,
                     xo_ref, *th_scratch,
                     osize, tile_c, n_col, mxu_dtype):
    j = pl.program_id(1)

    # Virtually-concatenated (inpute ‖ out_prev) bf16 tile, built once per row
    # block; the K-accumulation over the concat axis stays inside the MXU.
    @pl.when(j == 0)
    def _():
        xo_ref[...] = jnp.concatenate(
            [x_ref[...].astype(mxu_dtype), o_ref[...].astype(mxu_dtype)], axis=-1)

    # One column block of the fused (trans ‖ net[0]) GEMM.
    part = (jnp.dot(xo_ref[...], w_ref[...], preferred_element_type=jnp.float32)
            + b_ref[...])

    if n_col > 1:
        col0 = pl.multiple_of(j * tile_c, 128)
        th_scratch[0][:, pl.ds(col0, tile_c)] = part

    @pl.when(j == n_col - 1)
    def _epilogue():
        th = part if n_col == 1 else th_scratch[0][...]
        gsz = 3 * osize
        t = th[:, :gsz]          # gate pre-activations   [N, 3*osize]
        h = th[:, gsz:]          # hidden pre-activations [N, hsize]

        # Gate path: joint LayerNorm over flattened (3, osize), sigmoid, unbind.
        gates = jax.nn.sigmoid(_layernorm(t, g1_ref[...], b1_ref[...]))
        ig = gates[:, 0 * osize:1 * osize]
        fg = gates[:, 1 * osize:2 * osize]
        og = gates[:, 2 * osize:3 * osize]

        # Hidden path: LayerNorm -> ReLU -> Linear.
        h = jnp.maximum(_layernorm(h, g2_ref[...], b2_ref[...]), 0.0)
        hidden = (jnp.dot(h.astype(mxu_dtype), w2_ref[...],
                          preferred_element_type=jnp.float32) + bo_ref[...])

        # Gate arithmetic in f32; cell state stays f32 on the way out.
        cell = fg * c_ref[...].astype(jnp.float32) + ig * hidden
        out = og * cell
        out_ref[...] = out.astype(out_ref.dtype)
        cell_ref[...] = cell.astype(cell_ref.dtype)


def _plan_col_split(insz, wide, pinned_bytes, weight_budget):
    """Smallest column split of the fused [insz, wide] bf16 weight that fits."""
    best = (1, wide)
    for n_col in range(1, max(1, wide // 128) + 1):
        if wide % n_col:
            continue
        tile_c = wide // n_col
        if n_col > 1 and tile_c % 128:
            continue                       # keep column blocks lane-aligned
        bufs = 1 if n_col == 1 else 2      # constant index -> single buffer
        best = (n_col, tile_c)
        if bufs * tile_c * (insz * 2 + 4) + pinned_bytes <= weight_budget:
            return best
    return best


def _plan_tile_n(n, isize, osize, hsize, n_col, tile_c,
                 in_itemsize, out_itemsize, budget):
    wide = 3 * osize + hsize
    insz = isize + osize
    wbufs = 1 if n_col == 1 else 2
    # Pinned / column-blocked params: bf16 weights, f32 biases + LN affine.
    fixed = (wbufs * tile_c * (insz * 2 + 4)
             + hsize * isize * 2 + isize * 4
             + (2 * 3 * osize + 2 * hsize) * 4)
    # Per-row VMEM: double-buffered activations + outputs, scratch, live temps.
    per_row = (2 * (isize + osize) * in_itemsize      # x, o
               + 2 * osize * 4                        # cell_prev
               + 2 * osize * (out_itemsize + 4)       # out + f32 cell outputs
               + insz * 2                             # xo bf16 scratch
               + (wide * 4 if n_col > 1 else 0)       # th accumulator scratch
               + (wide + 3 * osize + hsize + isize + 2 * osize) * 4)  # f32 temps
    per_row = int(per_row * 1.25)                     # layout / regalloc slack
    avail = budget - fixed
    if avail <= 64 * per_row:
        raise ValueError(
            "LSTMCell4FFN: pinned parameters leave no room for row tiles in VMEM "
            f"(budget={budget}B, pinned~{fixed}B); widths this large need w2 "
            "column tiling / fp8 weights.")
    raw = avail // per_row
    if raw >= _MIN_TILE_N:
        return min(_MAX_TILE_N, raw // _MIN_TILE_N * _MIN_TILE_N)
    # VMEM-tight fallback: multiples of 64 rows, never the degenerate 8-row tile.
    return max(64, raw // 64 * 64)


def lstm_cell4ffn(inpute, out_prev, cell_prev, params, *,
                  mxu_dtype=jnp.bfloat16, tile_n=None):
    """inpute: [..., isize]; out_prev/cell_prev: [..., osize]. Returns (out, cell[f32])."""
    lead = inpute.shape[:-1]
    isize = inpute.shape[-1]
    osize = out_prev.shape[-1]
    hsize = params["w1"].shape[-1]
    wide = 3 * osize + hsize
    insz = isize + osize

    # x / out_prev may be fed in bf16 (halves activation read bytes on the
    # memory-bound v5e); the kernel casts at the MXU either way.  cell stays f32.
    x = inpute.reshape(-1, isize)
    o = out_prev.reshape(-1, osize)
    c = cell_prev.reshape(-1, osize)
    n = x.shape[0]

    budget = _vmem_budget_bytes()
    pinned = hsize * isize * 2 + isize * 4 + (2 * 3 * osize + 2 * hsize) * 4
    n_col, tile_c = _plan_col_split(insz, wide, pinned, budget // 2)
    if tile_n is None:
        tile_n = _plan_tile_n(n, isize, osize, hsize, n_col, tile_c,
                              jnp.dtype(x.dtype).itemsize,
                              jnp.dtype(inpute.dtype).itemsize, budget)
    tile_n = max(8, min(tile_n, _round_up(n, 8)))
    if n >= 2 * _MIN_TILE_N and _cdiv(n, tile_n) < 2:
        # Keep >= 2 row blocks so both v7x TensorCores get work.
        tile_n = _round_up(_cdiv(n, 2), _MIN_TILE_N)
    n_row = _cdiv(n, tile_n)

    # Fuse the two GEMMs sharing (inpute ‖ out_prev): concat trans / net[0]
    # weights along the output axis; no icat is ever materialized in HBM.
    w_in = jnp.concatenate([params["w_trans"], params["w1"]], axis=1).astype(mxu_dtype)
    b_in = jnp.concatenate([params["b_trans"], params["b1"]], axis=1).astype(jnp.float32)
    w2 = params["w2"].astype(mxu_dtype)
    b2 = params["b2"].astype(jnp.float32)

    one_buf = _single_buffer_kwargs()
    col_buf = one_buf if n_col == 1 else {}   # re-fetched column blocks keep dbl-buffer
    row = lambda f: pl.BlockSpec((tile_n, f), lambda i, j: (i, 0))
    pin = lambda a: pl.BlockSpec(a.shape, lambda i, j: (0, 0), **one_buf)

    in_specs = [row(isize), row(osize), row(osize),
                pl.BlockSpec((insz, tile_c), lambda i, j: (0, j), **col_buf),
                pl.BlockSpec((1, tile_c), lambda i, j: (0, j), **col_buf),
                pin(params["ln1_g"]), pin(params["ln1_b"]),
                pin(params["ln2_g"]), pin(params["ln2_b"]),
                pin(w2), pin(b2)]
    out_specs = (row(osize), row(osize))
    out_shape = (jax.ShapeDtypeStruct((n, osize), inpute.dtype),   # out
                 jax.ShapeDtypeStruct((n, osize), jnp.float32))    # cell (always f32)
    scratch = [pltpu.VMEM((tile_n, insz), mxu_dtype)]
    if n_col > 1:
        scratch.append(pltpu.VMEM((tile_n, wide), jnp.float32))

    flops = 2 * n * insz * wide + 2 * n * hsize * isize
    w_fetch = 1 if n_col == 1 else n_row
    bytes_acc = (x.nbytes + o.nbytes + c.nbytes
                 + n * osize * (jnp.dtype(inpute.dtype).itemsize + 4)
                 + w_fetch * (insz * wide * 2 + wide * 4)
                 + pinned)
    cost = pl.CostEstimate(flops=int(flops),
                           transcendentals=int(n * (3 * osize + 2)),
                           bytes_accessed=int(bytes_acc))

    out, cell = pl.pallas_call(
        functools.partial(_lstm_ffn_kernel, osize=osize, tile_c=tile_c,
                          n_col=n_col, mxu_dtype=mxu_dtype),
        grid=(n_row, n_col),
        out_shape=out_shape,
        in_specs=in_specs,
        out_specs=out_specs,
        scratch_shapes=scratch,
        compiler_params=pltpu.CompilerParams(
            dimension_semantics=("parallel", "arbitrary"),
            vmem_limit_bytes=int(budget)),
        cost_estimate=cost,
    )(x, o, c, w_in, b_in,
      params["ln1_g"], params["ln1_b"], params["ln2_g"], params["ln2_b"],
      w2, b2)

    return out.reshape(*lead, osize), cell.reshape(*lead, osize)


def init_params(key, isize, osize=None, hsize=None):
    osize = isize if osize is None else osize
    hsize = osize * 4 if hsize is None else hsize
    insz = isize + osize
    ks = jax.random.split(key, 3)

    def lin(k, fan_in, fan_out):
        kw, kb = jax.random.split(k)
        s = 1.0 / jnp.sqrt(fan_in)
        w = jax.random.uniform(kw, (fan_in, fan_out), jnp.float32, -s, s)
        b = jax.random.uniform(kb, (1, fan_out), jnp.float32, -s, s)
        return w, b

    w_trans, b_trans = lin(ks[0], insz, 3 * osize)
    w1, b1 = lin(ks[1], insz, hsize)
    w2, b2 = lin(ks[2], hsize, isize)
    return {
        "w_trans": w_trans, "b_trans": b_trans,
        "ln1_g": jnp.ones((1, 3 * osize), jnp.float32),   # LayerNorm((3, osize)) flattened
        "ln1_b": jnp.zeros((1, 3 * osize), jnp.float32),
        "w1": w1, "b1": b1,
        "ln2_g": jnp.ones((1, hsize), jnp.float32),
        "ln2_b": jnp.zeros((1, hsize), jnp.float32),
        "w2": w2, "b2": b2,
    }


def _reference(inpute, out_prev, cell_prev, p, mxu_dtype=jnp.bfloat16):
    """PyTorch-faithful math with the same bf16-at-the-MXU / f32-accumulate policy."""
    icat = jnp.concatenate([inpute, out_prev], -1).astype(mxu_dtype)

    def ln(v, g, b):
        mu = v.mean(-1, keepdims=True)
        var = ((v - mu) ** 2).mean(-1, keepdims=True)
        return (v - mu) / jnp.sqrt(var + EPS) * g + b

    t = jnp.dot(icat, p["w_trans"].astype(mxu_dtype),
                preferred_element_type=jnp.float32) + p["b_trans"][0]
    g = jax.nn.sigmoid(ln(t, p["ln1_g"][0], p["ln1_b"][0]))
    osz = out_prev.shape[-1]
    ig, fg, og = g[..., :osz], g[..., osz:2 * osz], g[..., 2 * osz:]
    h = jnp.dot(icat, p["w1"].astype(mxu_dtype),
                preferred_element_type=jnp.float32) + p["b1"][0]
    h = jnp.maximum(ln(h, p["ln2_g"][0], p["ln2_b"][0]), 0.0)
    hidden = jnp.dot(h.astype(mxu_dtype), p["w2"].astype(mxu_dtype),
                     preferred_element_type=jnp.float32) + p["b2"][0]
    cell = fg * cell_prev + ig * hidden
    return og * cell, cell


if __name__ == "__main__":
    key = jax.random.PRNGKey(0)
    k_p, k_x, k_o, k_c = jax.random.split(key, 4)

    batch, seq, isize = 2, 8, 32        # osize = isize = 32, hsize = 128
    params = init_params(k_p, isize)

    inpute = jax.random.normal(k_x, (batch, seq, isize), jnp.float32)
    out_prev = jax.random.normal(k_o, (batch, seq, isize), jnp.float32)
    cell_prev = jax.random.normal(k_c, (batch, seq, isize), jnp.float32)

    out, cell = jax.block_until_ready(
        lstm_cell4ffn(inpute, out_prev, cell_prev, params))

    ref_out, ref_cell = _reference(inpute, out_prev, cell_prev, params)
    assert out.shape == (batch, seq, isize) and cell.shape == (batch, seq, isize)
    assert jnp.allclose(out, ref_out, atol=2e-3, rtol=2e-3)
    assert jnp.allclose(cell, ref_cell.astype(cell.dtype), atol=2e-3, rtol=2e-3)

    print("KERNEL_OK")
</pallas_src>

<mosaic_0001>
module attributes {stable_mosaic.version = 11 : i64} {
  func.func @_lstm_ffn_kernel(%arg0: i32, %arg1: i32, %arg2: memref<16x32xf32, #tpu.memory_space<vmem>>, %arg3: memref<16x32xf32, #tpu.memory_space<vmem>>, %arg4: memref<16x32xf32, #tpu.memory_space<vmem>>, %arg5: memref<64x224xbf16, #tpu.memory_space<vmem>>, %arg6: memref<1x224xf32, #tpu.memory_space<vmem>>, %arg7: memref<1x96xf32, #tpu.memory_space<vmem>>, %arg8: memref<1x96xf32, #tpu.memory_space<vmem>>, %arg9: memref<1x128xf32, #tpu.memory_space<vmem>>, %arg10: memref<1x128xf32, #tpu.memory_space<vmem>>, %arg11: memref<128x32xbf16, #tpu.memory_space<vmem>>, %arg12: memref<1x32xf32, #tpu.memory_space<vmem>>, %arg13: memref<16x32xf32, #tpu.memory_space<vmem>>, %arg14: memref<16x32xf32, #tpu.memory_space<vmem>>, %arg15: memref<16x64xbf16, #tpu.memory_space<vmem>>) attributes {dimension_semantics = [#tpu.dimension_semantics<parallel>, #tpu.dimension_semantics<arbitrary>], iteration_bounds = array<i64: 1, 1>, scalar_prefetch = 0 : i64, scratch_operands = 1 : i64, tpu.core_type = #tpu.core_type<tc>, window_params = [{transform_indices = @transform_0, window_bounds = array<i64: 16, 32>}, {transform_indices = @transform_1, window_bounds = array<i64: 16, 32>}, {transform_indices = @transform_2, window_bounds = array<i64: 16, 32>}, {pipeline_mode = #tpu.pipeline_mode<synchronous>, transform_indices = @transform_3, window_bounds = array<i64: 64, 224>}, {pipeline_mode = #tpu.pipeline_mode<synchronous>, transform_indices = @transform_4, window_bounds = array<i64: 1, 224>}, {pipeline_mode = #tpu.pipeline_mode<synchronous>, transform_indices = @transform_5, window_bounds = array<i64: 1, 96>}, {pipeline_mode = #tpu.pipeline_mode<synchronous>, transform_indices = @transform_6, window_bounds = array<i64: 1, 96>}, {pipeline_mode = #tpu.pipeline_mode<synchronous>, transform_indices = @transform_7, window_bounds = array<i64: 1, 128>}, {pipeline_mode = #tpu.pipeline_mode<synchronous>, transform_indices = @transform_8, window_bounds = array<i64: 1, 128>}, {pipeline_mode = #tpu.pipeline_mode<synchronous>, transform_indices = @transform_9, window_bounds = array<i64: 128, 32>}, {pipeline_mode = #tpu.pipeline_mode<synchronous>, transform_indices = @transform_10, window_bounds = array<i64: 1, 32>}, {transform_indices = @transform_11, window_bounds = array<i64: 16, 32>}, {transform_indices = @transform_12, window_bounds = array<i64: 16, 32>}]} {
    %c0_i32 = arith.constant 0 : i32
    %0 = arith.cmpi eq, %arg1, %c0_i32 : i32
    %1 = arith.extui %0 : i1 to i32
    %c0_i32_0 = arith.constant 0 : i32
    %2 = arith.cmpi ne, %1, %c0_i32_0 : i32
    scf.if %2 {
      %c0_8 = arith.constant 0 : index
      %c0_9 = arith.constant 0 : index
      %12 = vector.load %arg2[%c0_8, %c0_9] : memref<16x32xf32, #tpu.memory_space<vmem>>, vector<16x32xf32>
      %13 = arith.truncf %12 : vector<16x32xf32> to vector<16x32xbf16>
      %c0_10 = arith.constant 0 : index
      %c0_11 = arith.constant 0 : index
      %14 = vector.load %arg3[%c0_10, %c0_11] : memref<16x32xf32, #tpu.memory_space<vmem>>, vector<16x32xf32>
      %15 = arith.truncf %14 : vector<16x32xf32> to vector<16x32xbf16>
      %16 = tpu.concatenate %13, %15 in 1 : vector<16x32xbf16>, vector<16x32xbf16> -> vector<16x64xbf16>
      %c0_12 = arith.constant 0 : index
      %c0_13 = arith.constant 0 : index
      %17 = vector.load %arg15[%c0_12, %c0_13] : memref<16x64xbf16, #tpu.memory_space<vmem>>, vector<16x64xbf16>
      tpu.vector_store %arg15[%c0_12, %c0_13], %16 {strides = array<i32>} : memref<16x64xbf16, #tpu.memory_space<vmem>>, vector<16x64xbf16>,
    } else {
    }
    %c0 = arith.constant 0 : index
    %c0_1 = arith.constant 0 : index
    %3 = vector.load %arg15[%c0, %c0_1] : memref<16x64xbf16, #tpu.memory_space<vmem>>, vector<16x64xbf16>
    %c0_2 = arith.constant 0 : index
    %c0_3 = arith.constant 0 : index
    %4 = vector.load %arg5[%c0_2, %c0_3] : memref<64x224xbf16, #tpu.memory_space<vmem>>, vector<64x224xbf16>
    %cst = arith.constant dense<0.000000e+00> : vector<16x224xf32>
    %5 = tpu.matmul %3, %4, %cst {dimension_numbers = #tpu.dot_dimension_numbers<[1], [0], [0], [1], [0, 0, 1, 1], [], []>} : vector<16x64xbf16>, vector<64x224xbf16>, vector<16x224xf32> -> vector<16x224xf32>
    %c0_4 = arith.constant 0 : index
    %c0_5 = arith.constant 0 : index
    %6 = vector.load %arg6[%c0_4, %c0_5] : memref<1x224xf32, #tpu.memory_space<vmem>>, vector<1x224xf32>
    %7 = vector.broadcast %6 : vector<1x224xf32> to vector<16x224xf32>
    %8 = arith.addf %5, %7 : vector<16x224xf32>
    %c0_i32_6 = arith.constant 0 : i32
    %9 = arith.cmpi eq, %arg1, %c0_i32_6 : i32
    %10 = arith.extui %9 : i1 to i32
    %c0_i32_7 = arith.constant 0 : i32
    %11 = arith.cmpi ne, %10, %c0_i32_7 : i32
    scf.if %11 {
      %12 = vector.extract_strided_slice %8 {offsets = [0, 0], sizes = [16, 96], strides = [1, 1]} : vector<16x224xf32> to vector<16x96xf32>
      %13 = vector.extract_strided_slice %8 {offsets = [0, 96], sizes = [16, 128], strides = [1, 1]} : vector<16x224xf32> to vector<16x128xf32>
      %c0_8 = arith.constant 0 : index
      %c0_9 = arith.constant 0 : index
      %14 = vector.load %arg7[%c0_8, %c0_9] : memref<1x96xf32, #tpu.memory_space<vmem>>, vector<1x96xf32>
      %c0_10 = arith.constant 0 : index
      %c0_11 = arith.constant 0 : index
      %15 = vector.load %arg8[%c0_10, %c0_11] : memref<1x96xf32, #tpu.memory_space<vmem>>, vector<1x96xf32>
      %cst_12 = arith.constant dense<0.000000e+00> : vector<16xf32>
      %16 = vector.multi_reduction <add>, %12, %cst_12 [1] : vector<16x96xf32> to vector<16xf32>
      %17 = vector.shape_cast %16 : vector<16xf32> to vector<16x1xf32>
      %cst_13 = arith.constant 9.600000e+01 : f32
      %18 = vector.broadcast %cst_13 : f32 to vector<16x1xf32>
      %19 = arith.divf %17, %18 : vector<16x1xf32>
      %20 = vector.broadcast %19 : vector<16x1xf32> to vector<16x96xf32>
      %21 = arith.subf %12, %20 : vector<16x96xf32>
      %22 = arith.mulf %21, %21 : vector<16x96xf32>
      %cst_14 = arith.constant dense<0.000000e+00> : vector<16xf32>
      %23 = vector.multi_reduction <add>, %22, %cst_14 [1] : vector<16x96xf32> to vector<16xf32>
      %24 = vector.shape_cast %23 : vector<16xf32> to vector<16x1xf32>
      %cst_15 = arith.constant 9.600000e+01 : f32
      %25 = vector.broadcast %cst_15 : f32 to vector<16x1xf32>
      %26 = arith.divf %24, %25 : vector<16x1xf32>
      %cst_16 = arith.constant 9.99999997E-7 : f32
      %27 = vector.broadcast %cst_16 : f32 to vector<16x1xf32>
      %28 = arith.addf %26, %27 : vector<16x1xf32>
      %29 = math.rsqrt %28 : vector<16x1xf32>
      %30 = vector.broadcast %29 : vector<16x1xf32> to vector<16x96xf32>
      %31 = arith.mulf %21, %30 : vector<16x96xf32>
      %32 = vector.broadcast %14 : vector<1x96xf32> to vector<16x96xf32>
      %33 = arith.mulf %31, %32 : vector<16x96xf32>
      %34 = vector.broadcast %15 : vector<1x96xf32> to vector<16x96xf32>
      %35 = arith.addf %33, %34 : vector<16x96xf32>
      %36 = arith.negf %35 : vector<16x96xf32>
      %37 = math.exp %36 : vector<16x96xf32>
      %cst_17 = arith.constant 1.000000e+00 : f32
      %38 = vector.broadcast %cst_17 : f32 to vector<16x96xf32>
      %39 = arith.addf %38, %37 : vector<16x96xf32>
      %40 = arith.divf %38, %39 : vector<16x96xf32>
      %41 = vector.extract_strided_slice %40 {offsets = [0, 0], sizes = [16, 32], strides = [1, 1]} : vector<16x96xf32> to vector<16x32xf32>
      %42 = vector.extract_strided_slice %40 {offsets = [0, 32], sizes = [16, 32], strides = [1, 1]} : vector<16x96xf32> to vector<16x32xf32>
      %43 = vector.extract_strided_slice %40 {offsets = [0, 64], sizes = [16, 32], strides = [1, 1]} : vector<16x96xf32> to vector<16x32xf32>
      %c0_18 = arith.constant 0 : index
      %c0_19 = arith.constant 0 : index
      %44 = vector.load %arg9[%c0_18, %c0_19] : memref<1x128xf32, #tpu.memory_space<vmem>>, vector<1x128xf32>
      %c0_20 = arith.constant 0 : index
      %c0_21 = arith.constant 0 : index
      %45 = vector.load %arg10[%c0_20, %c0_21] : memref<1x128xf32, #tpu.memory_space<vmem>>, vector<1x128xf32>
      %cst_22 = arith.constant dense<0.000000e+00> : vector<16xf32>
      %46 = vector.multi_reduction <add>, %13, %cst_22 [1] : vector<16x128xf32> to vector<16xf32>
      %47 = vector.shape_cast %46 : vector<16xf32> to vector<16x1xf32>
      %cst_23 = arith.constant 1.280000e+02 : f32
      %48 = vector.broadcast %cst_23 : f32 to vector<16x1xf32>
      %49 = arith.divf %47, %48 : vector<16x1xf32>
      %50 = vector.broadcast %49 : vector<16x1xf32> to vector<16x128xf32>
      %51 = arith.subf %13, %50 : vector<16x128xf32>
      %52 = arith.mulf %51, %51 : vector<16x128xf32>
      %cst_24 = arith.constant dense<0.000000e+00> : vector<16xf32>
      %53 = vector.multi_reduction <add>, %52, %cst_24 [1] : vector<16x128xf32> to vector<16xf32>
      %54 = vector.shape_cast %53 : vector<16xf32> to vector<16x1xf32>
      %cst_25 = arith.constant 1.280000e+02 : f32
      %55 = vector.broadcast %cst_25 : f32 to vector<16x1xf32>
      %56 = arith.divf %54, %55 : vector<16x1xf32>
      %cst_26 = arith.constant 9.99999997E-7 : f32
      %57 = vector.broadcast %cst_26 : f32 to vector<16x1xf32>
      %58 = arith.addf %56, %57 : vector<16x1xf32>
      %59 = math.rsqrt %58 : vector<16x1xf32>
      %60 = vector.broadcast %59 : vector<16x1xf32> to vector<16x128xf32>
      %61 = arith.mulf %51, %60 : vector<16x128xf32>
      %62 = vector.broadcast %44 : vector<1x128xf32> to vector<16x128xf32>
      %63 = arith.mulf %61, %62 : vector<16x128xf32>
      %64 = vector.broadcast %45 : vector<1x128xf32> to vector<16x128xf32>
      %65 = arith.addf %63, %64 : vector<16x128xf32>
      %cst_27 = arith.constant 0.000000e+00 : f32
      %66 = vector.broadcast %cst_27 : f32 to vector<16x128xf32>
      %67 = arith.maximumf %65, %66 : vector<16x128xf32>
      %68 = arith.truncf %67 : vector<16x128xf32> to vector<16x128xbf16>
      %c0_28 = arith.constant 0 : index
      %c0_29 = arith.constant 0 : index
      %69 = vector.load %arg11[%c0_28, %c0_29] : memref<128x32xbf16, #tpu.memory_space<vmem>>, vector<128x32xbf16>
      %cst_30 = arith.constant dense<0.000000e+00> : vector<16x32xf32>
      %70 = tpu.matmul %68, %69, %cst_30 {dimension_numbers = #tpu.dot_dimension_numbers<[1], [0], [0], [1], [0, 0, 1, 1], [], []>} : vector<16x128xbf16>, vector<128x32xbf16>, vector<16x32xf32> -> vector<16x32xf32>
      %c0_31 = arith.constant 0 : index
      %c0_32 = arith.constant 0 : index
      %71 = vector.load %arg12[%c0_31, %c0_32] : memref<1x32xf32, #tpu.memory_space<vmem>>, vector<1x32xf32>
      %72 = vector.broadcast %71 : vector<1x32xf32> to vector<16x32xf32>
      %73 = arith.addf %70, %72 : vector<16x32xf32>
      %c0_33 = arith.constant 0 : index
      %c0_34 = arith.constant 0 : index
      %74 = vector.load %arg4[%c0_33, %c0_34] : memref<16x32xf32, #tpu.memory_space<vmem>>, vector<16x32xf32>
      %75 = arith.mulf %42, %74 : vector<16x32xf32>
      %76 = arith.mulf %41, %73 : vector<16x32xf32>
      %77 = arith.addf %75, %76 : vector<16x32xf32>
      %78 = arith.mulf %43, %77 : vector<16x32xf32>
      %c0_35 = arith.constant 0 : index
      %c0_36 = arith.constant 0 : index
      %79 = vector.load %arg13[%c0_35, %c0_36] : memref<16x32xf32, #tpu.memory_space<vmem>>, vector<16x32xf32>
      tpu.vector_store %arg13[%c0_35, %c0_36], %78 {strides = array<i32>} : memref<16x32xf32, #tpu.memory_space<vmem>>, vector<16x32xf32>,
      %c0_37 = arith.constant 0 : index
      %c0_38 = arith.constant 0 : index
      %80 = vector.load %arg14[%c0_37, %c0_38] : memref<16x32xf32, #tpu.memory_space<vmem>>, vector<16x32xf32>
      tpu.vector_store %arg14[%c0_37, %c0_38], %77 {strides = array<i32>} : memref<16x32xf32, #tpu.memory_space<vmem>>, vector<16x32xf32>,
    } else {
    }
    return
  }
  func.func @transform_0(%arg0: i32, %arg1: i32) -> (i32, i32) {
    %c0_i32 = arith.constant 0 : i32
    %c0_i32_0 = arith.constant 0 : i32
    return %arg0, %c0_i32 : i32, i32
  }
  func.func @transform_1(%arg0: i32, %arg1: i32) -> (i32, i32) {
    %c0_i32 = arith.constant 0 : i32
    %c0_i32_0 = arith.constant 0 : i32
    return %arg0, %c0_i32 : i32, i32
  }
  func.func @transform_2(%arg0: i32, %arg1: i32) -> (i32, i32) {
    %c0_i32 = arith.constant 0 : i32
    %c0_i32_0 = arith.constant 0 : i32
    return %arg0, %c0_i32 : i32, i32
  }
  func.func @transform_3(%arg0: i32, %arg1: i32) -> (i32, i32) {
    %c0_i32 = arith.constant 0 : i32
    %c0_i32_0 = arith.constant 0 : i32
    return %c0_i32, %arg1 : i32, i32
  }
  func.func @transform_4(%arg0: i32, %arg1: i32) -> (i32, i32) {
    %c0_i32 = arith.constant 0 : i32
    %c0_i32_0 = arith.constant 0 : i32
    return %c0_i32, %arg1 : i32, i32
  }
  func.func @transform_5(%arg0: i32, %arg1: i32) -> (i32, i32) {
    %c0_i32 = arith.constant 0 : i32
    %c0_i32_0 = arith.constant 0 : i32
    %c0_i32_1 = arith.constant 0 : i32
    return %c0_i32, %c0_i32_0 : i32, i32
  }
  func.func @transform_6(%arg0: i32, %arg1: i32) -> (i32, i32) {
    %c0_i32 = arith.constant 0 : i32
    %c0_i32_0 = arith.constant 0 : i32
    %c0_i32_1 = arith.constant 0 : i32
    return %c0_i32, %c0_i32_0 : i32, i32
  }
  func.func @transform_7(%arg0: i32, %arg1: i32) -> (i32, i32) {
    %c0_i32 = arith.constant 0 : i32
    %c0_i32_0 = arith.constant 0 : i32
    %c0_i32_1 = arith.constant 0 : i32
    return %c0_i32, %c0_i32_0 : i32, i32
  }
  func.func @transform_8(%arg0: i32, %arg1: i32) -> (i32, i32) {
    %c0_i32 = arith.constant 0 : i32
    %c0_i32_0 = arith.constant 0 : i32
    %c0_i32_1 = arith.constant 0 : i32
    return %c0_i32, %c0_i32_0 : i32, i32
  }
  func.func @transform_9(%arg0: i32, %arg1: i32) -> (i32, i32) {
    %c0_i32 = arith.constant 0 : i32
    %c0_i32_0 = arith.constant 0 : i32
    %c0_i32_1 = arith.constant 0 : i32
    return %c0_i32, %c0_i32_0 : i32, i32
  }
  func.func @transform_10(%arg0: i32, %arg1: i32) -> (i32, i32) {
    %c0_i32 = arith.constant 0 : i32
    %c0_i32_0 = arith.constant 0 : i32
    %c0_i32_1 = arith.constant 0 : i32
    return %c0_i32, %c0_i32_0 : i32, i32
  }
  func.func @transform_11(%arg0: i32, %arg1: i32) -> (i32, i32) {
    %c0_i32 = arith.constant 0 : i32
    %c0_i32_0 = arith.constant 0 : i32
    return %arg0, %c0_i32 : i32, i32
  }
  func.func @transform_12(%arg0: i32, %arg1: i32) -> (i32, i32) {
    %c0_i32 = arith.constant 0 : i32
    %c0_i32_0 = arith.constant 0 : i32
    return %arg0, %c0_i32 : i32, i32
  }
}

</mosaic_0001>

<bundles_post_ra>
// kernel: tpu_custom_call.1
= control target key start
LH: loop header
LB: loop body
LE: loop exit
PB: predicated region body
PF: predicated region fallthrough
CT: control target
= control target key end

     0   :  { %18 = vsyncpa [#allocation4], 0  ;;  %s1024_s0 = inlined_call_operand.vmem [shape: f32[16,32], index: 0, kind: input, shape index: {}]   ;;  %s1025_s1 = inlined_call_operand.hbm [shape: f32[16,32], index: 1, kind: input, shape index: {}]   ;;  %s1026_s2 = inlined_call_operand.hbm [shape: f32[16,32], index: 2, kind: input, shape index: {}]   ;;  %s1027_s3 = inlined_call_operand.vmem [shape: bf16[64,224], index: 3, kind: input, shape index: {}]   ;;  %s1028_s4 = inlined_call_operand.vmem [shape: f32[1,224], index: 4, kind: input, shape index: {}]   ;;  %s1029_s5 = inlined_call_operand.vmem [shape: f32[1,96], index: 5, kind: input, shape index: {}]   ;;  %s1030_s6 = inlined_call_operand.vmem [shape: f32[1,96], index: 6, kind: input, shape index: {}]   ;;  %s1031_s7 = inlined_call_operand.vmem [shape: f32[1,128], index: 7, kind: input, shape index: {}]   ;;  %s1032_s8 = inlined_call_operand.vmem [shape: f32[1,128], index: 8, kind: input, shape index: {}]   ;;  %s1033_s9 = inlined_call_operand.vmem [shape: bf16[128,32], index: 9, kind: input, shape index: {}]   ;;  %s1034_s10 = inlined_call_operand.vmem [shape: f32[1,32], index: 10, kind: input, shape index: {}]   ;;  %s1035_s11 = inlined_call_operand.hbm [shape: f32[16,32], index: 11, kind: output, shape index: {0}]   ;;  %s1036_s12 = inlined_call_operand.hbm [shape: f32[16,32], index: 12, kind: output, shape index: {1}]  }
   0x1   :  { %19 = vsyncpa [#allocation7], 0 }
   0x2   :  { %20 = vsyncpa [#allocation5], 0 }
   0x3   :  { %21 = vsyncpa [#allocation10], 0  ;;  %s758_s21 = smov [#allocation3]   ;;  %s662_s25 = scalar_lea.hbm %s1025_s1, 256 }
   0x4   :  { %s29_s22 = sshll.u32 %s758_s21, 4  ;;  %p663_p0 = scmp.ne.s32.totalorder %s1025_s1, %s662_s25  ;;  %s30_s22 = int_to_ptr.vmem [resolvable:$true] %s29_s22 }
   0x5   :  { %p666_p1 = scmp.lt.u32.totalorder %s662_s25, %s1025_s1 }
   0x7   :  { %p668_p2 = pnand %p666_p1, %p663_p0 }
   0x9   :  { %671 = shalt.err (!%p668_p2)
}
   0xa   :  { %s672_s30 = scalar_lea.vmem %s30_s22, 256  ;;  %p677_p4 = scmp.lt.s32.totalorder %s30_s22, %s30_s22 }
   0xb   :  { %p673_p3 = scmp.ne.s32.totalorder %s30_s22, %s672_s30  ;;  %p678_p5 = scmp.lt.s32.totalorder %s672_s30, %s672_s30 }
   0xd   :  { %p679_p6 = por %p678_p5, %p677_p4 }
   0xf   :  { %p680_p7 = pnand %p679_p6, %p673_p3 }
  0x11   :  { %683 = shalt.err (!%p680_p7)
}
  0x12   :  { %s759_s13 = smov 128   ;;  %s760_s14 = smov 8  }
  0x13   :  { %35 = dma.hbm_to_vmem [thread:$0]  %s1025_s1, 256, %s30_s22, [#allocation4], %s759_s13, %s759_s13, %s760_s14  }
  0x14   :  { %s761_s17 = smov [#allocation6]   ;;  %s684_s21 = scalar_lea.hbm %s1026_s2, 256 }
  0x15   :  { %s41_s18 = sshll.u32 %s761_s17, 4  ;;  %p685_p8 = scmp.ne.s32.totalorder %s1026_s2, %s684_s21  ;;  %s42_s18 = int_to_ptr.vmem [resolvable:$true] %s41_s18 }
  0x16   :  { %p688_p9 = scmp.lt.u32.totalorder %s684_s21, %s1026_s2 }
  0x18   :  { %p690_p10 = pnand %p688_p9, %p685_p8 }
  0x1a   :  { %693 = shalt.err (!%p690_p10)
}
  0x1b   :  { %s694_s27 = scalar_lea.vmem %s42_s18, 256  ;;  %p699_p12 = scmp.lt.s32.totalorder %s42_s18, %s42_s18 }
  0x1c   :  { %p695_p11 = scmp.ne.s32.totalorder %s42_s18, %s694_s27  ;;  %p700_p13 = scmp.lt.s32.totalorder %s694_s27, %s694_s27 }
  0x1e   :  { %p701_p0 = por %p700_p13, %p699_p12 }
  0x20   :  { %p702_p1 = pnand %p701_p0, %p695_p11 }
  0x22   :  { %705 = shalt.err (!%p702_p1)
}
  0x23   :  { %47 = dma.hbm_to_vmem [thread:$0]  %s1026_s2, 256, %s42_s18, [#allocation7], %s759_s13, %s759_s13, %s760_s14  }
  0x24   :  { %750 = dma.done.wait [#allocation4], 256  }
  0x25   :  { %751 = vsyncadd [#allocation4], 4294967040 }
  0x26   :  { %752 = dma.done.wait [#allocation7], 256  }
  0x27   :  { %753 = vsyncadd [#allocation7], 4294967040  ;;  %v762_v0 = vmov 0   ;;  %v78_v1 = vld [vmem:[#allocation3] sm:$0xff]  ;;  %v79_v2 = vld [vmem:[#allocation3 + $0x8] sm:$0xff]  ;;  %s763_s2 = smov 32   ;;  %v102_v18 = vlaneseq }
  0x28   :  { %188 = vmatprep.mubr.bf16.mxu0 %v762_v0  ;;  %v80_v3 = vpack.c.bf16 %v79_v2, %v78_v1  ;;  %v626_v4 = vld [vmem:[%s1027_s3 + $0x4] ss:$8 sps:$4 sm:$0xff]   ;;  %v628_v5 = vld [vmem:[%s1027_s3] ss:$8 sps:$4 sm:$0xff]   ;;  %v629_v6 = vld [vmem:[%s1027_s3 + $0x14] ss:$8 sps:$4 sm:$0xff]  }
  0x29   :  { %156 = vmatprep.subr.bf16.mxu0 %v626_v4  ;;  %v631_v7 = vld [vmem:[%s1027_s3 + $0x10] ss:$8 sps:$4 sm:$0xff]   ;;  %v632_v8 = vld [vmem:[%s1027_s3 + $0x24] ss:$8 sps:$4 sm:$0xff]   ;;  %v634_v9 = vld [vmem:[%s1027_s3 + $0x20] ss:$8 sps:$4 sm:$0xff]  }
  0x2a   :  { %82 = vrot.lane.b32.xlu0 %v80_v3, %s763_s2  ;;  %157 = vmatpush1.bf16.msra.mxu0 %v628_v5  ;;  %v635_v10 = vld [vmem:[%s1027_s3 + $0x34] ss:$8 sps:$4 sm:$0xff]   ;;  %v637_v11 = vld [vmem:[%s1027_s3 + $0x30] ss:$8 sps:$4 sm:$0xff]   ;;  %v75_v12 = vld [vmem:[%s1024_s0] sm:$0xff]  ;;  %vm84_vm0 = vcmask 261120  }
  0x2b   :  { %158 = vmatprep.subr.bf16.mxu0 %v629_v6  ;;  %v76_v13 = vld [vmem:[%s1024_s0 + $0x8] sm:$0xff]  ;;  %vm89_vm1 = vcmask 523264   ;;  %v103_v19 = vshrl.u32 %v102_v18, 7  ;;  %v100_v21 = vld [vmem:[%s1028_s4] sm:$0x3]  ;;  %s764_s16 = smov 96  }
  0x2c   :  { %v77_v14 = vpack.c.bf16 %v76_v13, %v75_v12  ;;  %v575_v57 = vld [vmem:[%s1032_s8] ss:$0 sm:$0xff]  ;;  %v765_v60 = vmov 0.0   ;;  %v639_v61 = vld [vmem:[%s1033_s9 + $0x8] sm:$0xff]   ;;  %v640_v62 = vld [vmem:[%s1033_s9 + $0x10] sm:$0xff]   ;;  %vm766_vm2 = vmmov 0  }
  0x2d   :  { %v104_v20 = vsub.s32 0, %v103_v19  ;;  %v108_v22 = vsub.s32 1, %v103_v19  ;;  %v574_v58 = vld [vmem:[%s1031_s7] ss:$0 sm:$0xff]  ;;  %594 = vmatprep.subr.bf16.mxu1 %v765_v60  ;;  %v641_v63 = vld [vmem:[%s1033_s9 + $0x18] sm:$0xff]   ;;  %v643_v1 = vld [vmem:[%s1033_s9 + $0x28] sm:$0xff]   ;;  %610 = vmatprep.mubr.msk.bf16.mxu1 %vm766_vm2, %v765_v60 }
  0x2e   :  { %159 = vmatpush1.bf16.msra.mxu0 %v631_v7  ;;  %v638_v59 = vld [vmem:[%s1033_s9] sm:$0xff]   ;;  %v644_v2 = vld [vmem:[%s1033_s9 + $0x30] sm:$0xff]   ;;  %v645_v3 = vld [vmem:[%s1033_s9 + $0x38] sm:$0xff]   ;;  %vm204_vm3 = vcmask 785408  }
  0x2f   :  { %160 = vmatprep.subr.bf16.mxu0 %v632_v8  ;;  %v105_v23 = vrot.slane %v100_v21, %v104_v20  ;;  %v109_v24 = vrot.slane %v100_v21, %v108_v22  ;;  %595 = vmatpush3.bf16.msra.mxu1 %v638_v59  ;;  %v642_v0 = vld [vmem:[%s1033_s9 + $0x20] sm:$0xff]  }
  0x30   :  { %596 = vmatprep.subr.bf16.mxu1 %v765_v60 }
  0x32   :  { %161 = vmatpush1.bf16.msra.mxu0 %v634_v9 }
  0x33   :  { %162 = vmatprep.subr.bf16.mxu0 %v635_v10  ;;  %597 = vmatpush3.bf16.msra.mxu1 %v639_v61 }
  0x34   :  { %598 = vmatprep.subr.bf16.mxu1 %v765_v60 }
  0x36   :  { %163 = vmatpush1.bf16.msra.mxu0 %v637_v11 }
  0x37   :  { %599 = vmatpush3.bf16.msra.mxu1 %v640_v62  ;;  %v571_v62 = vld [vmem:[%s1030_s6] ss:$0 sm:$0xff]  ;;  %s767_s6 = smov 64  }
  0x38   :  { %600 = vmatprep.subr.bf16.mxu1 %v765_v60 }
  0x3b   :  { %601 = vmatpush3.bf16.msra.mxu1 %v641_v63 }
  0x3c   :  { %602 = vmatprep.subr.bf16.mxu1 %v765_v60 }
  0x3f   :  { %603 = vmatpush3.bf16.msra.mxu1 %v642_v0 }
  0x40   :  { %604 = vmatprep.subr.bf16.mxu1 %v765_v60 }
  0x43   :  { %605 = vmatpush3.bf16.msra.mxu1 %v643_v1 }
  0x44   :  { %606 = vmatprep.subr.bf16.mxu1 %v765_v60 }
  0x47   :  { %607 = vmatpush3.bf16.msra.mxu1 %v644_v2 }
  0x48   :  { %608 = vmatprep.subr.bf16.mxu1 %v765_v60  ;;  %v570_v60 = vld [vmem:[%s1029_s5] ss:$0 sm:$0xff] }
  0x4b   :  { %609 = vmatpush3.bf16.msra.mxu1 %v645_v3 }
  0x9c   :  { %v83_v15 = vpop.permute.xlu0 %82 }
  0x9d   :  { %v87_v16 = vsel %vm84_vm0, %v77_v14, %v83_v15 }
  0x9e   :  { %90 = vst.msk [vmem:[#allocation2] sm:$0xff] %vm89_vm1, %v87_v16 }
  0xa5   :  { %v91_v17 = vld [vmem:[#allocation2] sm:$0xff] }
  0xa6   :  { %569 = vmatmul.mubr.msk.bf16.vlgmr.msra.gmra.mrb[0].mxu0 %vm89_vm1, %v91_v17 }
 0x179   :  { %v190_v25 = vpop.f32.mrb[0].mxu0 }
 0x17a   :  { %v900_v26 = vadd.f32 %v190_v25, %v105_v23  ;;  %v192_v27 = vpop.f32.mrb[1].mxu0 }
 0x17b   :  { %v193_v28 = vadd.f32 %v192_v27, %v109_v24  ;;  %v194_v29 = vpop.f32.mrb[2].mxu0 }
 0x17c   :  { %v196_v30 = vpop.f32.mrb[3].mxu0  ;;  %266 = vrot.lane.b32.xlu0 %v900_v26, %s763_s2  ;;  %v905_v32 = vadd.f32 %v194_v29, %v105_v23 }
 0x17d   :  { %v197_v31 = vadd.f32 %v196_v30, %v109_v24  ;;  %268 = vrot.lane.b32.xlu1 %v193_v28, %s763_s2 }
 0x180   :  { %272 = vrot.lane.b32.xlu0 %v197_v31, %s763_s2 }
 0x181   :  { %270 = vrot.lane.b32.xlu1 %v905_v32, %s763_s2 }
 0x1ee   :  { %v267_v33 = vpop.permute.xlu0 %266 }
 0x1ef   :  { %v269_v34 = vpop.permute.xlu1 %268 }
 0x1f0   :  { %v275_v35 = vsel %vm84_vm0, %v267_v33, %v269_v34  ;;  %v208_v34 = vsel %vm204_vm3, %v905_v32, 0.0 }
 0x1f1   :  { %279 = vadd.xlane.f32.xlu1 %v275_v35  ;;  %v205_v35 = vsel %vm204_vm3, %v900_v26, 0.0 }
 0x1f2   :  { %v273_v36 = vpop.permute.xlu0 %272 }
 0x1f3   :  { %v271_v37 = vpop.permute.xlu1 %270 }
 0x1f4   :  { %v276_v38 = vsel %vm84_vm0, %v271_v37, %v273_v36 }
 0x1f5   :  { %281 = vadd.xlane.f32.xlu0 %v276_v38 }
 0x27e   :  { %v280_v39 = vpop.xlane.xlu1 %279 }
 0x27f   :  { %v284_v40 = vmul.f32 0.0078125, %v280_v39 }
 0x281   :  { %v286_v41 = vsub.f32 %v900_v26, %v284_v40  ;;  %v287_v42 = vsub.f32 %v193_v28, %v284_v40 }
 0x282   :  { %v282_v43 = vpop.xlane.xlu0 %281 }
 0x283   :  { %v285_v44 = vmul.f32 0.0078125, %v282_v43  ;;  %v291_v45 = vmul.f32 %v287_v42, %v287_v42  ;;  %v290_v46 = vmul.f32 %v286_v41, %v286_v41 }
 0x285   :  { %v914_v47 = vsub.f32 %v905_v32, %v285_v44  ;;  %v916_v48 = vsub.f32 %v197_v31, %v285_v44  ;;  %300 = vrot.lane.b32.xlu1 %v291_v45, %s763_s2  ;;  %298 = vrot.lane.b32.xlu0 %v290_v46, %s763_s2 }
 0x287   :  { %v293_v49 = vmul.f32 %v916_v48, %v916_v48  ;;  %v292_v50 = vmul.f32 %v914_v47, %v914_v47 }
 0x289   :  { %304 = vrot.lane.b32.xlu0 %v293_v49, %s763_s2  ;;  %302 = vrot.lane.b32.xlu1 %v292_v50, %s763_s2  ;;  %v476_v49 = vld [vmem:[#allocation6 + $0x8] sm:$0xff]  ;;  %v475_v50 = vld [vmem:[#allocation6] sm:$0xff] }
 0x2f7   :  { %v301_v51 = vpop.permute.xlu1 %300  ;;  %v299_v52 = vpop.permute.xlu0 %298 }
 0x2f8   :  { %v306_v53 = vsel %vm84_vm0, %v299_v52, %v301_v51 }
 0x2f9   :  { %310 = vadd.xlane.f32.xlu1 %v306_v53 }
 0x2fb   :  { %v303_v54 = vpop.permute.xlu1 %302  ;;  %v305_v55 = vpop.permute.xlu0 %304 }
 0x2fc   :  { %v307_v56 = vsel %vm84_vm0, %v303_v54, %v305_v55 }
 0x2fd   :  { %312 = vadd.xlane.f32.xlu0 %v307_v56 }
 0x30a   :  { %341 = vrot.lane.b32.xlu1 %v575_v57, %s764_s16 }
 0x313   :  { %329 = vrot.lane.b32.xlu0 %v574_v58, %s764_s16 }
 0x386   :  { %v311_v4 = vpop.xlane.xlu1 %310 }
 0x387   :  { %v314_v5 = vmul.f32 0.0078125, %v311_v4 }
 0x389   :  { %v316_v6 = vadd.f32 1e-06, %v314_v5 }
 0x38a   :  { %v313_v7 = vpop.xlane.xlu0 %312  ;;  %v342_v17 = vpop.permute.xlu1 %341 }
 0x38b   :  { %646 = vrsqrt.f32 %v316_v6  ;;  %v315_v8 = vmul.f32 0.0078125, %v313_v7 }
 0x38d   :  { %v317_v9 = vadd.f32 1e-06, %v315_v8 }
 0x38e   :  { %v330_v11 = vpop.permute.xlu0 %329 }
 0x38f   :  { %648 = vrsqrt.f32 %v317_v9 }
 0x395   :  { %v647_v10 = vpop.eup %646 }
 0x396   :  { %v320_v12 = vmul.f32 %v647_v10, %v286_v41  ;;  %v321_v13 = vmul.f32 %v647_v10, %v287_v42 }
 0x398   :  { %v332_v14 = vmul.f32 %v330_v11, %v320_v12  ;;  %v333_v15 = vmul.f32 %v330_v11, %v321_v13 }
 0x399   :  { %v649_v16 = vpop.eup %648 }
 0x39a   :  { %v322_v18 = vmul.f32 %v649_v16, %v914_v47  ;;  %v323_v19 = vmul.f32 %v649_v16, %v916_v48  ;;  %v344_v22 = vadd.f32 %v342_v17, %v332_v14  ;;  %v345_v23 = vadd.f32 %v342_v17, %v333_v15 }
 0x39c   :  { %v334_v20 = vmul.f32 %v330_v11, %v322_v18  ;;  %v335_v21 = vmul.f32 %v330_v11, %v323_v19  ;;  %v349_v27 = vmax.f32 %v345_v23, 0.0  ;;  %v348_v29 = vmax.f32 %v344_v22, 0.0  ;;  %v576_v11 = vld [vmem:[%s1034_s10] ss:$0 sm:$0xff]  ;;  %s768_s10 = smov [#allocation8]  }
 0x39d   :  { %s532_s18 = sshll.u32 %s768_s10, 4  ;;  %s533_s18 = int_to_ptr.vmem [resolvable:$true] %s532_s18 }
 0x39e   :  { %v346_v24 = vadd.f32 %v342_v17, %v334_v20  ;;  %v347_v25 = vadd.f32 %v342_v17, %v335_v21  ;;  %s706_s20 = scalar_lea.vmem %s533_s18, 256  ;;  %p711_p3 = scmp.lt.s32.totalorder %s533_s18, %s533_s18 }
 0x39f   :  { %p707_p2 = scmp.ne.s32.totalorder %s533_s18, %s706_s20  ;;  %p712_p4 = scmp.lt.s32.totalorder %s706_s20, %s706_s20 }
 0x3a0   :  { %v351_v28 = vmax.f32 %v347_v25, 0.0  ;;  %v350_v30 = vmax.f32 %v346_v24, 0.0 }
 0x3a1   :  { %p713_p5 = por %p712_p4, %p711_p3 }
 0x3a2   :  { %v353_v31 = vpack.c.bf16 %v351_v28, %v349_v27  ;;  %v352_v33 = vpack.c.bf16 %v350_v30, %v348_v29 }
 0x3a3   :  { %p714_p6 = pnand %p713_p5, %p707_p2 }
 0x3a4   :  { %381 = vrot.lane.b32.xlu0 %v353_v31, %s763_s2  ;;  %379 = vrot.lane.b32.xlu1 %v352_v33, %s763_s2 }
 0x3c3   :  { %209 = vadd.xlane.f32.xlu0 %v208_v34 }
 0x3c8   :  { %206 = vadd.xlane.f32.xlu1 %v205_v35 }
 0x416   :  { %v382_v36 = vpop.permute.xlu0 %381  ;;  %v380_v37 = vpop.permute.xlu1 %379 }
 0x417   :  { %v384_v38 = vsel %vm84_vm0, %v380_v37, %v382_v36 }
 0x418   :  { %611 = vmatmul.mubr.bf16.vlgmr.msra.gmra.mrb[0].mxu1 %v384_v38 }
 0x450   :  { %v210_v39 = vpop.xlane.xlu0 %209 }
 0x451   :  { %v213_v40 = vmul.f32 0.010416667, %v210_v39 }
 0x453   :  { %v215_v41 = vsub.f32 %v905_v32, %v213_v40 }
 0x455   :  { %v207_v42 = vpop.xlane.xlu1 %206  ;;  %v217_v43 = vmul.f32 %v215_v41, %v215_v41 }
 0x456   :  { %v212_v44 = vmul.f32 0.010416667, %v207_v42 }
 0x457   :  { %v221_v45 = vsel %vm204_vm3, %v217_v43, 0.0 }
 0x458   :  { %v214_v46 = vsub.f32 %v900_v26, %v212_v44  ;;  %222 = vadd.xlane.f32.xlu1 %v221_v45 }
 0x45a   :  { %v216_v47 = vmul.f32 %v214_v46, %v214_v46 }
 0x45c   :  { %v218_v48 = vsel %vm204_vm3, %v216_v47, 0.0 }
 0x45d   :  { %219 = vadd.xlane.f32.xlu0 %v218_v48 }
 0x469   :  { %481 = vrot.lane.b32.xlu1 %v476_v49, %s763_s2 }
 0x473   :  { %479 = vrot.lane.b32.xlu0 %v475_v50, %s763_s2 }
 0x4e5   :  { %v223_v51 = vpop.xlane.xlu1 %222 }
 0x4e6   :  { %v225_v32 = vmul.f32 0.010416667, %v223_v51 }
 0x4e8   :  { %v227_v52 = vadd.f32 1e-06, %v225_v32 }
 0x4e9   :  { %v482_v18 = vpop.permute.xlu1 %481 }
 0x4ea   :  { %650 = vrsqrt.f32 %v227_v52  ;;  %v220_v53 = vpop.xlane.xlu0 %219 }
 0x4eb   :  { %v224_v54 = vmul.f32 0.010416667, %v220_v53  ;;  %v468_v55 = vpop.f32.mrb[0].mxu1 }
 0x4ec   :  { %v612_v56 = vpop.f32.mrb[1].mxu1  ;;  %v469_v15 = vadd.f32 %v576_v11, %v468_v55 }
 0x4ed   :  { %v226_v26 = vadd.f32 1e-06, %v224_v54  ;;  %v471_v57 = vpop.f32.mrb[2].mxu1 }
 0x4ee   :  { %v613_v58 = vpop.f32.mrb[3].mxu1  ;;  %v472_v12 = vadd.f32 %v576_v11, %v471_v57  ;;  %v480_v19 = vpop.permute.xlu0 %479 }
 0x4ef   :  { %652 = vrsqrt.f32 %v226_v26 }
 0x4f4   :  { %v651_v59 = vpop.eup %650 }
 0x4f5   :  { %v231_v61 = vmul.f32 %v651_v59, %v215_v41 }
 0x4f7   :  { %v239_v63 = vmul.f32 %v570_v60, %v231_v61 }
 0x4f9   :  { %v653_v0 = vpop.eup %652  ;;  %v247_v1 = vadd.f32 %v571_v62, %v239_v63 }
 0x4fa   :  { %v230_v2 = vmul.f32 %v653_v0, %v214_v46 }
 0x4fb   :  { %v573_v3 = vmul.f32 -1.442695, %v247_v1 }
 0x4fc   :  { %v238_v4 = vmul.f32 %v570_v60, %v230_v2 }
 0x4fd   :  { %654 = vpow2.f32 %v573_v3 }
 0x4fe   :  { %v246_v5 = vadd.f32 %v571_v62, %v238_v4 }
 0x500   :  { %v572_v6 = vmul.f32 -1.442695, %v246_v5 }
 0x502   :  { %656 = vpow2.f32 %v572_v6 }
 0x507   :  { %v655_v7 = vpop.eup %654 }
 0x508   :  { %v255_v8 = vadd.f32 1.0, %v655_v7 }
 0x50a   :  { %658 = vrcp.f32 %v255_v8 }
 0x50c   :  { %v657_v9 = vpop.eup %656 }
 0x50d   :  { %v254_v10 = vadd.f32 1.0, %v657_v9 }
 0x50f   :  { %660 = vrcp.f32 %v254_v10 }
 0x514   :  { %v659_v13 = vpop.eup %658 }
 0x515   :  { %v488_v14 = vmul.f32 %v659_v13, %v472_v12  ;;  %v486_v20 = vmul.f32 %v659_v13, %v482_v18 }
 0x517   :  { %493 = vrot.lane.b32.xlu0 %v488_v14, %s763_s2 }
 0x519   :  { %v661_v16 = vpop.eup %660 }
 0x51a   :  { %v487_v17 = vmul.f32 %v661_v16, %v469_v15  ;;  %v485_v23 = vmul.f32 %v661_v16, %v480_v19 }
 0x51c   :  { %491 = vrot.lane.b32.xlu1 %v487_v17, %s763_s2 }
 0x589   :  { %v494_v21 = vpop.permute.xlu0 %493 }
 0x58a   :  { %v498_v22 = vadd.f32 %v494_v21, %v486_v20 }
 0x58c   :  { %503 = vrot.lane.b32.xlu0 %v498_v22, %s763_s2 }
 0x58e   :  { %v492_v24 = vpop.permute.xlu1 %491 }
 0x58f   :  { %v497_v25 = vadd.f32 %v492_v24, %v485_v23 }
 0x591   :  { %501 = vrot.lane.b32.xlu1 %v497_v25, %s763_s2  ;;  %s769_s2 = smov [#allocation9]  }
 0x592   :  { %s544_s19 = sshll.u32 %s769_s2, 4  ;;  %s545_s19 = int_to_ptr.vmem [resolvable:$true] %s544_s19 }
 0x5fe   :  { %v504_v27 = vpop.permute.xlu0 %503 }
 0x5ff   :  { %v508_v28 = vmul.f32 %v659_v13, %v504_v27 }
 0x601   :  { %513 = vrot.lane.b32.xlu0 %v508_v28, %s767_s6 }
 0x603   :  { %v502_v29 = vpop.permute.xlu1 %501 }
 0x604   :  { %v507_v30 = vmul.f32 %v661_v16, %v502_v29 }
 0x605   :  { %521 = vrot.lane.b32.xlu0 %v498_v22, %s764_s16 }
 0x606   :  { %511 = vrot.lane.b32.xlu1 %v507_v30, %s767_s6 }
 0x60a   :  { %519 = vrot.lane.b32.xlu1 %v497_v25, %s764_s16 }
 0x673   :  { %v514_v31 = vpop.permute.xlu0 %513 }
 0x674   :  { %518 = vst.msk [vmem:[#allocation8 + $0x8] sm:$0xff] %vm84_vm0, %v514_v31 }
 0x677   :  { %v522_v33 = vpop.permute.xlu0 %521 }
 0x678   :  { %526 = vst.msk [vmem:[#allocation9 + $0x8] sm:$0xff] %vm84_vm0, %v522_v33  ;;  %v512_v34 = vpop.permute.xlu1 %511 }
 0x679   :  { %517 = vst.msk [vmem:[#allocation8] sm:$0xff] %vm84_vm0, %v512_v34 }
 0x67a   :  { %717 = shalt.err (!%p714_p6)
}
 0x67b   :  { %s718_s23 = scalar_lea.hbm %s1035_s11, 256 }
 0x67c   :  { %p719_p7 = scmp.ne.s32.totalorder %s1035_s11, %s718_s23  ;;  %p722_p8 = scmp.lt.u32.totalorder %s718_s23, %s1035_s11 }
 0x67e   :  { %p724_p9 = pnand %p722_p8, %p719_p7 }
 0x680   :  { %727 = shalt.err (!%p724_p9)
}
 0x681   :  { %538 = dma.vmem_to_hbm [thread:$0]  %s533_s18, 256, %s1035_s11, [#allocation5], %s759_s13, %s759_s13, %s760_s14   ;;  %v520_v35 = vpop.permute.xlu1 %519 }
 0x682   :  { %525 = vst.msk [vmem:[#allocation9] sm:$0xff] %vm84_vm0, %v520_v35  ;;  %s728_s1 = scalar_lea.vmem %s545_s19, 256  ;;  %p733_p11 = scmp.lt.s32.totalorder %s545_s19, %s545_s19 }
 0x683   :  { %p729_p10 = scmp.ne.s32.totalorder %s545_s19, %s728_s1  ;;  %p734_p12 = scmp.lt.s32.totalorder %s728_s1, %s728_s1 }
 0x685   :  { %p735_p13 = por %p734_p12, %p733_p11 }
 0x687   :  { %p736_p0 = pnand %p735_p13, %p729_p10 }
 0x689   :  { %739 = shalt.err (!%p736_p0)
}
 0x68a   :  { %s740_s29 = scalar_lea.hbm %s1036_s12, 256 }
 0x68b   :  { %p741_p1 = scmp.ne.s32.totalorder %s1036_s12, %s740_s29  ;;  %p744_p2 = scmp.lt.u32.totalorder %s740_s29, %s1036_s12 }
 0x68d   :  { %p746_p3 = pnand %p744_p2, %p741_p1 }
 0x68f   :  { %749 = shalt.err (!%p746_p3)
}
 0x690   :  { %550 = dma.vmem_to_hbm [thread:$0]  %s545_s19, 256, %s1036_s12, [#allocation10], %s759_s13, %s759_s13, %s760_s14  }
 0x691   :  { %754 = dma.done.wait [#allocation5], 256  }
 0x692   :  { %755 = vsyncadd [#allocation5], 4294967040 }
 0x693   :  { %756 = dma.done.wait [#allocation10], 256  }
 0x694   :  { %757 = vsyncadd [#allocation10], 4294967040 }
 0x695   :  { %557 = vsyncpa [#allocation4], 1 }
 0x696   :  { %558 = vsyncpa [#allocation7], 1 }
 0x697   :  { %559 = vsyncpa [#allocation5], 1 }
 0x698   :  { %560 = vsyncpa [#allocation10], 1 }

</bundles_post_ra>
